<compile_context>
chip_gen: v7x
topology: tpu7x:2x2x1
jax: 0.10.0
libtpu: 0.0.40
codegen_flags: <defaults>
</compile_context>

<pallas_src>
import math

import jax
import jax.numpy as jnp
from jax.experimental import pallas as pl
from jax.experimental.pallas import tpu as pltpu


def _activate(y, act):
    if act == "gelu":
        # TODO(synk): PyTorch F.gelu defaults to the exact erf form; Mosaic does not guarantee
        # an erf lowering, so the tanh approximation is used (max abs deviation ~3e-3).
        return jax.nn.gelu(y, approximate=True)
    if act == "relu":
        return jnp.maximum(y, 0.0)
    if act == "swish":
        return y * jax.nn.sigmoid(y)
    raise ValueError(f"unsupported act: {act}")


# ----------------------------------------------------------------------------
# Pallas kernel factory (kernel_size, T, B, act are static).
# ----------------------------------------------------------------------------
def _make_ffn_kernel(kernel_size, T, B, act):
    pad = kernel_size // 2

    def kernel(x_ref, emo1_ref, emo2_ref, w1x_ref, b1_ref, w2h_ref, b2_ref, out_ref):
        x = x_ref[...].astype(jnp.bfloat16)          # [R, H]  rows ordered t*B + b
        R = x.shape[0]
        Fdim = b1_ref.shape[-1]

        if kernel_size > 1:
            rid = jax.lax.broadcasted_iota(jnp.int32, (R, 1), 0)

        # ffn_1: SAME conv as kernel_size tap matmuls over the data channels only.  The roll and
        # boundary mask act on the bf16 [R, H] input, not the f32 [R, F] product.
        y = jnp.zeros((R, Fdim), jnp.float32)
        for j in range(kernel_size):
            d = j - pad
            xs = x
            if d != 0:
                # Row shift by d*B == time shift by d (requires R == T*B; enforced in wrapper).
                xs = pltpu.roll(x, shift=(-d * B) % R, axis=0)
                # Zero rows whose source time index t+d falls in the conv's zero padding.  The
                # emotion channels' padding is handled in the precomputed emo1 slab.
                valid = (rid < (T - d) * B) if d > 0 else (rid >= (-d) * B)
                xs = jnp.where(valid, xs, jnp.zeros((), jnp.bfloat16))
            y = y + jnp.dot(xs, w1x_ref[j], preferred_element_type=jnp.float32)

        # Emotion channels and the kernel_size**-0.5 scale are folded in host-side: emo1_ref
        # already holds scale * (emotion @ W1e[j]) summed over valid taps per row; w1x_ref / b1
        # are pre-scaled.  No K=E MXU pass and no extra VPU scale pass.
        y = y + emo1_ref[...] + b1_ref[...]
        h = _activate(y, act).astype(jnp.bfloat16)   # dropout: identity at inference

        # ffn_2: Linear over the data features; emotion part precomputed as emo2_ref rows.
        o = (jnp.dot(h, w2h_ref[...], preferred_element_type=jnp.float32)
             + emo2_ref[...] + b2_ref[...])
        out_ref[...] = o.astype(out_ref.dtype)

    return kernel


# ----------------------------------------------------------------------------
# Tiling / VMEM heuristics
# ----------------------------------------------------------------------------
def _vmem_limit_bytes():
    """Per-generation VMEM limit: 96 MiB on 128-MiB parts (v5e/v6e), 48 MiB on 64-MiB v7x."""
    try:
        cap = int(pltpu.get_tpu_info().vmem_capacity_bytes)
    except Exception:
        return 32 * 1024 * 1024
    if cap >= 100 * 1024 * 1024:
        return 96 * 1024 * 1024
    if cap >= 48 * 1024 * 1024:
        return 48 * 1024 * 1024
    return 32 * 1024 * 1024


def _pick_row_block(total_rows, batch, kernel_size, H, F, vmem_limit, cap=2048):
    """Rows per grid step.  Must divide total_rows and be a multiple of batch (the emotion
    slab is B-periodic).  Prefers multiples of 8 (sublane alignment) and >= 2 blocks so
    "parallel" can shard row blocks across v7x's two TensorCores."""
    if kernel_size != 1:
        # TODO(synk): halo row tiling; roll/mask currently need the full time extent per block.
        return total_rows
    # Crude per-row VMEM estimate: double-buffered x/out blocks + f32 y/h temps + emotion slabs.
    per_row = 16 * H + 16 * F
    budget = max(vmem_limit // 2, per_row * batch)
    cap = max(batch, min(cap, budget // per_row))
    target = min(cap, max(batch, total_rows // 2))   # >= 2 blocks when possible
    best, best8 = None, None
    for r in range(batch, target + 1, batch):
        if total_rows % r:
            continue
        best = r
        if r % 8 == 0:
            best8 = r
    if best is None:
        return total_rows
    if best8 is not None and 2 * best8 >= best:
        return best8
    return best


# ----------------------------------------------------------------------------
# Wrapper
# ----------------------------------------------------------------------------
def emotion_transformer_ffn_layer(emotion, x, params, *, kernel_size=1,
                                  padding="SAME", act="gelu", out_dtype=None):
    """emotion: [B, E]; x: [T, B, H] (seq-first). Returns [T, B, H] (dtype out_dtype or x.dtype)."""
    if padding != "SAME":
        # TODO(synk): padding='LEFT' (causal ConstantPad1d) variant not implemented.
        raise NotImplementedError("only padding='SAME' is implemented")
    if kernel_size % 2 != 1:
        raise NotImplementedError("only odd kernel_size is implemented (SAME length)")

    T, B, H = x.shape
    F = params["b1"].shape[-1]
    TB = T * B
    pad = kernel_size // 2
    scale = float(kernel_size) ** -0.5
    out_dtype = x.dtype if out_dtype is None else out_dtype

    vmem_limit = _vmem_limit_bytes()
    R = _pick_row_block(TB, B, kernel_size, H, F, vmem_limit)
    if kernel_size > 1:
        assert R == TB, "conv path requires the full time extent in one block (TODO: halo tiling)"
    grid = (TB // R,)

    # Time-major row flattening: free, contiguous reshape (no transposes, no wrapper dtype cast:
    # x is cast to bf16 inside the kernel so it is read from HBM exactly once).
    x2d = x.reshape(TB, H)

    # Weights: bf16 for the MXU; kernel_size**-0.5 folded into ffn_1 weights/bias (this and the
    # casts are one-time parameter-load transforms in production).  Biases stay f32 lane rows.
    w1x = (params["W1x"].astype(jnp.float32) * scale).astype(jnp.bfloat16)   # [k, H, F]
    w2h = params["W2h"].astype(jnp.bfloat16)                                 # [F, H]
    b1 = (params["b1"].astype(jnp.float32) * scale).reshape(1, F)
    b2 = params["b2"].astype(jnp.float32).reshape(1, H)

    # Emotion contributions: exact tiny matmuls, tiled to one block-row slab (B-periodic, so the
    # same slab serves every row block).  For kernel_size > 1 the conv's zero padding of the
    # emotion channels is applied here (R == TB on that path).
    emotion_f = emotion.astype(jnp.float32)
    w1e_s = params["W1e"].astype(jnp.float32) * scale                        # [k, E, F]
    emo1_taps = jnp.einsum("be,kef->kbf", emotion_f, w1e_s)                  # [k, B, F]
    if kernel_size == 1:
        emo1_rows = jnp.tile(emo1_taps[0], (R // B, 1))                      # [R, F]
    else:
        t = jnp.arange(T)
        acc = jnp.zeros((T, B, F), jnp.float32)
        for j in range(kernel_size):
            d = j - pad
            valid = ((t + d) >= 0) & ((t + d) < T)
            acc = acc + jnp.where(valid[:, None, None], emo1_taps[j][None], 0.0)
        emo1_rows = acc.reshape(TB, F)                                       # [TB, F]
    emo2_rows = jnp.tile(emotion_f @ params["W2e"].astype(jnp.float32), (R // B, 1))  # [R, H]

    kernel = _make_ffn_kernel(kernel_size, T, B, act)
    row_spec = pl.BlockSpec((R, H), lambda i: (i, 0))

    def call(single_buffer_consts):
        def const_spec(shape):
            nd = len(shape)
            kw = {}
            if single_buffer_consts:
                kw["pipeline_mode"] = pl.Buffered(1)   # constant index: one VMEM copy is enough
            return pl.BlockSpec(shape, lambda i: (0,) * nd, **kw)

        return pl.pallas_call(
            kernel,
            out_shape=jax.ShapeDtypeStruct((TB, H), out_dtype),
            grid_spec=pltpu.PrefetchScalarGridSpec(
                num_scalar_prefetch=0,
                grid=grid,
                in_specs=[
                    row_spec,                      # x rows (block i)
                    const_spec(emo1_rows.shape),   # ffn_1 emotion slab
                    const_spec(emo2_rows.shape),   # ffn_2 emotion slab
                    const_spec(w1x.shape),
                    const_spec(b1.shape),
                    const_spec(w2h.shape),
                    const_spec(b2.shape),
                ],
                out_specs=pl.BlockSpec((R, H), lambda i: (i, 0)),
            ),
            compiler_params=pltpu.CompilerParams(
                dimension_semantics=("parallel",),   # row blocks independent (megacore on v7x)
                vmem_limit_bytes=vmem_limit,
            ),
        )(x2d, emo1_rows, emo2_rows, w1x, b1, w2h, b2)

    try:
        out2d = call(True)
    except Exception:
        # pipeline_mode=pl.Buffered(1) not supported by this JAX build: fall back to defaults.
        out2d = call(False)

    return out2d.reshape(T, B, H)


# ----------------------------------------------------------------------------
# Pure-JAX f32 reference: mirrors the PyTorch forward literally (concat formulation).
# Uses the same tanh-approximate gelu as the kernel (see TODO in _activate).
# ----------------------------------------------------------------------------
def reference(emotion, x, params, *, kernel_size=1, act="gelu"):
    T, B, H = x.shape
    E = emotion.shape[-1]
    k = kernel_size
    pad = k // 2
    f32 = jnp.float32

    e_tbe = jnp.broadcast_to(emotion.astype(f32)[None], (T, B, E))
    # EmotionConv1d: concat emotion channels first, then SAME conv over time (zero-pads both).
    cin = jnp.concatenate([e_tbe, x.astype(f32)], axis=-1)                    # [T, B, E+H]
    cin = jnp.pad(cin, ((pad, pad), (0, 0), (0, 0)))
    w1 = jnp.concatenate([params["W1e"], params["W1x"]], axis=1).astype(f32)  # [k, E+H, F]
    F = w1.shape[-1]
    y = jnp.zeros((T, B, F), f32)
    for j in range(k):
        y = y + jnp.einsum("tbi,if->tbf", cin[j:j + T], w1[j], precision="highest")
    y = (y + params["b1"].astype(f32)) * (k ** -0.5)
    h = _activate(y, act)                                                     # dropout: identity
    # EmotionLinear: concat emotion features first, then linear.
    lin_in = jnp.concatenate([e_tbe, h], axis=-1)                             # [T, B, E+F]
    w2 = jnp.concatenate([params["W2e"], params["W2h"]], axis=0).astype(f32)  # [E+F, H]
    return jnp.einsum("tbi,io->tbo", lin_in, w2, precision="highest") + params["b2"].astype(f32)


def init_params(key, E, H, F, kernel_size):
    """PyTorch-equivalent init, stored pre-split (emotion / data halves) in [in, out] layout:
    Conv1d(H+E -> F, k):  W1e [k,E,F], W1x [k,H,F], b1 [F]
    Linear(F+E -> H):     W2e [E,H],   W2h [F,H],   b2 [H]"""
    k1, k2, k3, k4 = jax.random.split(key, 4)
    bound1 = 1.0 / math.sqrt((E + H) * kernel_size)
    w1 = jax.random.uniform(k1, (kernel_size, E + H, F), jnp.float32, -bound1, bound1)
    b1 = jax.random.uniform(k2, (F,), jnp.float32, -bound1, bound1)
    bound2 = 1.0 / math.sqrt(E + F)
    w2 = jax.random.uniform(k3, (E + F, H), jnp.float32, -bound2, bound2)
    b2 = jax.random.uniform(k4, (H,), jnp.float32, -bound2, bound2)
    return {"W1e": w1[:, :E, :], "W1x": w1[:, E:, :], "b1": b1,
            "W2e": w2[:E, :], "W2h": w2[E:, :], "b2": b2}


if __name__ == "__main__":
    # NOTE: production shapes should keep H, F multiples of 128 (lane-dense output / full-rate
    # MXU); the demo shapes below are deliberately small.
    T, B, E, H, F = 16, 2, 4, 32, 64    # seq, batch, emotion_features, hidden, filter

    key = jax.random.PRNGKey(0)
    k_emo, k_x, k_par = jax.random.split(key, 3)
    emotion = jax.random.normal(k_emo, (B, E), jnp.float32)
    x = jax.random.normal(k_x, (T, B, H), jnp.float32)

    # kernel_size=1 is the module default (tiled, grid >= 2); kernel_size=3 exercises the
    # SAME-conv path (pltpu.roll + boundary mask on the bf16 input).
    for ks in (1, 3):
        params = init_params(k_par, E, H, F, ks)
        out = emotion_transformer_ffn_layer(emotion, x, params, kernel_size=ks)
        jax.block_until_ready(out)
        ref = reference(emotion, x, params, kernel_size=ks)
        assert out.shape == (T, B, H), out.shape
        max_err = float(jnp.max(jnp.abs(out - ref)))
        assert jnp.allclose(out, ref, rtol=1e-2, atol=1e-2), (ks, max_err)

    print("KERNEL_OK")
</pallas_src>

<mosaic_0001>
module attributes {stable_mosaic.version = 11 : i64} {
  func.func @kernel(%arg0: i32, %arg1: memref<16x32xf32, #tpu.memory_space<vmem>>, %arg2: memref<16x64xf32, #tpu.memory_space<vmem>>, %arg3: memref<16x32xf32, #tpu.memory_space<vmem>>, %arg4: memref<1x32x64xbf16, #tpu.memory_space<vmem>>, %arg5: memref<1x64xf32, #tpu.memory_space<vmem>>, %arg6: memref<64x32xbf16, #tpu.memory_space<vmem>>, %arg7: memref<1x32xf32, #tpu.memory_space<vmem>>, %arg8: memref<16x32xf32, #tpu.memory_space<vmem>>) attributes {dimension_semantics = [#tpu.dimension_semantics<parallel>], iteration_bounds = array<i64: 2>, scalar_prefetch = 0 : i64, scratch_operands = 0 : i64, tpu.core_type = #tpu.core_type<tc>, window_params = [{transform_indices = @transform_0, window_bounds = array<i64: 16, 32>}, {pipeline_mode = #tpu.pipeline_mode<synchronous>, transform_indices = @transform_1, window_bounds = array<i64: 16, 64>}, {pipeline_mode = #tpu.pipeline_mode<synchronous>, transform_indices = @transform_2, window_bounds = array<i64: 16, 32>}, {pipeline_mode = #tpu.pipeline_mode<synchronous>, transform_indices = @transform_3, window_bounds = array<i64: 1, 32, 64>}, {pipeline_mode = #tpu.pipeline_mode<synchronous>, transform_indices = @transform_4, window_bounds = array<i64: 1, 64>}, {pipeline_mode = #tpu.pipeline_mode<synchronous>, transform_indices = @transform_5, window_bounds = array<i64: 64, 32>}, {pipeline_mode = #tpu.pipeline_mode<synchronous>, transform_indices = @transform_6, window_bounds = array<i64: 1, 32>}, {transform_indices = @transform_7, window_bounds = array<i64: 16, 32>}]} {
    %c0 = arith.constant 0 : index
    %c0_0 = arith.constant 0 : index
    %0 = vector.load %arg1[%c0, %c0_0] : memref<16x32xf32, #tpu.memory_space<vmem>>, vector<16x32xf32>
    %1 = arith.truncf %0 : vector<16x32xf32> to vector<16x32xbf16>
    %cst = arith.constant 0.000000e+00 : f32
    %2 = vector.broadcast %cst : f32 to vector<16x64xf32>
    %c0_1 = arith.constant 0 : index
    %c0_2 = arith.constant 0 : index
    %c0_3 = arith.constant 0 : index
    %3 = vector.load %arg4[%c0_1, %c0_2, %c0_3] : memref<1x32x64xbf16, #tpu.memory_space<vmem>>, vector<1x32x64xbf16>
    %4 = vector.shape_cast %3 : vector<1x32x64xbf16> to vector<32x64xbf16>
    %cst_4 = arith.constant dense<0.000000e+00> : vector<16x64xf32>
    %5 = tpu.matmul %1, %4, %cst_4 {dimension_numbers = #tpu.dot_dimension_numbers<[1], [0], [0], [1], [0, 0, 1, 1], [], []>} : vector<16x32xbf16>, vector<32x64xbf16>, vector<16x64xf32> -> vector<16x64xf32>
    %6 = arith.addf %2, %5 : vector<16x64xf32>
    %c0_5 = arith.constant 0 : index
    %c0_6 = arith.constant 0 : index
    %7 = vector.load %arg2[%c0_5, %c0_6] : memref<16x64xf32, #tpu.memory_space<vmem>>, vector<16x64xf32>
    %8 = arith.addf %6, %7 : vector<16x64xf32>
    %c0_7 = arith.constant 0 : index
    %c0_8 = arith.constant 0 : index
    %9 = vector.load %arg5[%c0_7, %c0_8] : memref<1x64xf32, #tpu.memory_space<vmem>>, vector<1x64xf32>
    %10 = vector.broadcast %9 : vector<1x64xf32> to vector<16x64xf32>
    %11 = arith.addf %8, %10 : vector<16x64xf32>
    %12 = arith.mulf %11, %11 : vector<16x64xf32>
    %13 = arith.mulf %11, %12 : vector<16x64xf32>
    %cst_9 = arith.constant 4.471500e-02 : f32
    %14 = vector.broadcast %cst_9 : f32 to vector<16x64xf32>
    %15 = arith.mulf %14, %13 : vector<16x64xf32>
    %16 = arith.addf %11, %15 : vector<16x64xf32>
    %cst_10 = arith.constant 0.797884583 : f32
    %17 = vector.broadcast %cst_10 : f32 to vector<16x64xf32>
    %18 = arith.mulf %17, %16 : vector<16x64xf32>
    %19 = math.tanh %18 : vector<16x64xf32>
    %cst_11 = arith.constant 1.000000e+00 : f32
    %20 = vector.broadcast %cst_11 : f32 to vector<16x64xf32>
    %21 = arith.addf %20, %19 : vector<16x64xf32>
    %cst_12 = arith.constant 5.000000e-01 : f32
    %22 = vector.broadcast %cst_12 : f32 to vector<16x64xf32>
    %23 = arith.mulf %22, %21 : vector<16x64xf32>
    %24 = arith.mulf %11, %23 : vector<16x64xf32>
    %25 = arith.truncf %24 : vector<16x64xf32> to vector<16x64xbf16>
    %c0_13 = arith.constant 0 : index
    %c0_14 = arith.constant 0 : index
    %26 = vector.load %arg6[%c0_13, %c0_14] : memref<64x32xbf16, #tpu.memory_space<vmem>>, vector<64x32xbf16>
    %cst_15 = arith.constant dense<0.000000e+00> : vector<16x32xf32>
    %27 = tpu.matmul %25, %26, %cst_15 {dimension_numbers = #tpu.dot_dimension_numbers<[1], [0], [0], [1], [0, 0, 1, 1], [], []>} : vector<16x64xbf16>, vector<64x32xbf16>, vector<16x32xf32> -> vector<16x32xf32>
    %c0_16 = arith.constant 0 : index
    %c0_17 = arith.constant 0 : index
    %28 = vector.load %arg3[%c0_16, %c0_17] : memref<16x32xf32, #tpu.memory_space<vmem>>, vector<16x32xf32>
    %29 = arith.addf %27, %28 : vector<16x32xf32>
    %c0_18 = arith.constant 0 : index
    %c0_19 = arith.constant 0 : index
    %30 = vector.load %arg7[%c0_18, %c0_19] : memref<1x32xf32, #tpu.memory_space<vmem>>, vector<1x32xf32>
    %31 = vector.broadcast %30 : vector<1x32xf32> to vector<16x32xf32>
    %32 = arith.addf %29, %31 : vector<16x32xf32>
    %c0_20 = arith.constant 0 : index
    %c0_21 = arith.constant 0 : index
    %33 = vector.load %arg8[%c0_20, %c0_21] : memref<16x32xf32, #tpu.memory_space<vmem>>, vector<16x32xf32>
    tpu.vector_store %arg8[%c0_20, %c0_21], %32 {strides = array<i32>} : memref<16x32xf32, #tpu.memory_space<vmem>>, vector<16x32xf32>,
    return
  }
  func.func @transform_0(%arg0: i32) -> (i32, i32) {
    %c0_i32 = arith.constant 0 : i32
    %c0_i32_0 = arith.constant 0 : i32
    return %arg0, %c0_i32 : i32, i32
  }
  func.func @transform_1(%arg0: i32) -> (i32, i32) {
    %c0_i32 = arith.constant 0 : i32
    %c0_i32_0 = arith.constant 0 : i32
    %c0_i32_1 = arith.constant 0 : i32
    return %c0_i32, %c0_i32_0 : i32, i32
  }
  func.func @transform_2(%arg0: i32) -> (i32, i32) {
    %c0_i32 = arith.constant 0 : i32
    %c0_i32_0 = arith.constant 0 : i32
    %c0_i32_1 = arith.constant 0 : i32
    return %c0_i32, %c0_i32_0 : i32, i32
  }
  func.func @transform_3(%arg0: i32) -> (i32, i32, i32) {
    %c0_i32 = arith.constant 0 : i32
    %c0_i32_0 = arith.constant 0 : i32
    %c0_i32_1 = arith.constant 0 : i32
    %c0_i32_2 = arith.constant 0 : i32
    return %c0_i32, %c0_i32_0, %c0_i32_1 : i32, i32, i32
  }
  func.func @transform_4(%arg0: i32) -> (i32, i32) {
    %c0_i32 = arith.constant 0 : i32
    %c0_i32_0 = arith.constant 0 : i32
    %c0_i32_1 = arith.constant 0 : i32
    return %c0_i32, %c0_i32_0 : i32, i32
  }
  func.func @transform_5(%arg0: i32) -> (i32, i32) {
    %c0_i32 = arith.constant 0 : i32
    %c0_i32_0 = arith.constant 0 : i32
    %c0_i32_1 = arith.constant 0 : i32
    return %c0_i32, %c0_i32_0 : i32, i32
  }
  func.func @transform_6(%arg0: i32) -> (i32, i32) {
    %c0_i32 = arith.constant 0 : i32
    %c0_i32_0 = arith.constant 0 : i32
    %c0_i32_1 = arith.constant 0 : i32
    return %c0_i32, %c0_i32_0 : i32, i32
  }
  func.func @transform_7(%arg0: i32) -> (i32, i32) {
    %c0_i32 = arith.constant 0 : i32
    %c0_i32_0 = arith.constant 0 : i32
    return %arg0, %c0_i32 : i32, i32
  }
}

module attributes {stable_mosaic.version = 11 : i64} {
  func.func @kernel(%arg0: i32, %arg1: memref<16x32xf32, #tpu.memory_space<vmem>>, %arg2: memref<16x64xf32, #tpu.memory_space<vmem>>, %arg3: memref<16x32xf32, #tpu.memory_space<vmem>>, %arg4: memref<1x32x64xbf16, #tpu.memory_space<vmem>>, %arg5: memref<1x64xf32, #tpu.memory_space<vmem>>, %arg6: memref<64x32xbf16, #tpu.memory_space<vmem>>, %arg7: memref<1x32xf32, #tpu.memory_space<vmem>>, %arg8: memref<16x32xf32, #tpu.memory_space<vmem>>) attributes {dimension_semantics = [#tpu.dimension_semantics<parallel>], iteration_bounds = array<i64: 2>, scalar_prefetch = 0 : i64, scratch_operands = 0 : i64, tpu.core_type = #tpu.core_type<tc>, window_params = [{transform_indices = @transform_0, window_bounds = array<i64: 16, 32>}, {pipeline_mode = #tpu.pipeline_mode<synchronous>, transform_indices = @transform_1, window_bounds = array<i64: 16, 64>}, {pipeline_mode = #tpu.pipeline_mode<synchronous>, transform_indices = @transform_2, window_bounds = array<i64: 16, 32>}, {pipeline_mode = #tpu.pipeline_mode<synchronous>, transform_indices = @transform_3, window_bounds = array<i64: 1, 32, 64>}, {pipeline_mode = #tpu.pipeline_mode<synchronous>, transform_indices = @transform_4, window_bounds = array<i64: 1, 64>}, {pipeline_mode = #tpu.pipeline_mode<synchronous>, transform_indices = @transform_5, window_bounds = array<i64: 64, 32>}, {pipeline_mode = #tpu.pipeline_mode<synchronous>, transform_indices = @transform_6, window_bounds = array<i64: 1, 32>}, {transform_indices = @transform_7, window_bounds = array<i64: 16, 32>}]} {
    %c0 = arith.constant 0 : index
    %c0_0 = arith.constant 0 : index
    %0 = vector.load %arg1[%c0, %c0_0] : memref<16x32xf32, #tpu.memory_space<vmem>>, vector<16x32xf32>
    %1 = arith.truncf %0 : vector<16x32xf32> to vector<16x32xbf16>
    %cst = arith.constant 0.000000e+00 : f32
    %2 = vector.broadcast %cst : f32 to vector<16x64xf32>
    %c0_1 = arith.constant 0 : index
    %c0_2 = arith.constant 0 : index
    %c0_3 = arith.constant 0 : index
    %3 = vector.load %arg4[%c0_1, %c0_2, %c0_3] : memref<1x32x64xbf16, #tpu.memory_space<vmem>>, vector<1x32x64xbf16>
    %4 = vector.shape_cast %3 : vector<1x32x64xbf16> to vector<32x64xbf16>
    %cst_4 = arith.constant dense<0.000000e+00> : vector<16x64xf32>
    %5 = tpu.matmul %1, %4, %cst_4 {dimension_numbers = #tpu.dot_dimension_numbers<[1], [0], [0], [1], [0, 0, 1, 1], [], []>} : vector<16x32xbf16>, vector<32x64xbf16>, vector<16x64xf32> -> vector<16x64xf32>
    %6 = arith.addf %2, %5 : vector<16x64xf32>
    %c0_5 = arith.constant 0 : index
    %c0_6 = arith.constant 0 : index
    %7 = vector.load %arg2[%c0_5, %c0_6] : memref<16x64xf32, #tpu.memory_space<vmem>>, vector<16x64xf32>
    %8 = arith.addf %6, %7 : vector<16x64xf32>
    %c0_7 = arith.constant 0 : index
    %c0_8 = arith.constant 0 : index
    %9 = vector.load %arg5[%c0_7, %c0_8] : memref<1x64xf32, #tpu.memory_space<vmem>>, vector<1x64xf32>
    %10 = vector.broadcast %9 : vector<1x64xf32> to vector<16x64xf32>
    %11 = arith.addf %8, %10 : vector<16x64xf32>
    %12 = arith.mulf %11, %11 : vector<16x64xf32>
    %13 = arith.mulf %11, %12 : vector<16x64xf32>
    %cst_9 = arith.constant 4.471500e-02 : f32
    %14 = vector.broadcast %cst_9 : f32 to vector<16x64xf32>
    %15 = arith.mulf %14, %13 : vector<16x64xf32>
    %16 = arith.addf %11, %15 : vector<16x64xf32>
    %cst_10 = arith.constant 0.797884583 : f32
    %17 = vector.broadcast %cst_10 : f32 to vector<16x64xf32>
    %18 = arith.mulf %17, %16 : vector<16x64xf32>
    %19 = math.tanh %18 : vector<16x64xf32>
    %cst_11 = arith.constant 1.000000e+00 : f32
    %20 = vector.broadcast %cst_11 : f32 to vector<16x64xf32>
    %21 = arith.addf %20, %19 : vector<16x64xf32>
    %cst_12 = arith.constant 5.000000e-01 : f32
    %22 = vector.broadcast %cst_12 : f32 to vector<16x64xf32>
    %23 = arith.mulf %22, %21 : vector<16x64xf32>
    %24 = arith.mulf %11, %23 : vector<16x64xf32>
    %25 = arith.truncf %24 : vector<16x64xf32> to vector<16x64xbf16>
    %c0_13 = arith.constant 0 : index
    %c0_14 = arith.constant 0 : index
    %26 = vector.load %arg6[%c0_13, %c0_14] : memref<64x32xbf16, #tpu.memory_space<vmem>>, vector<64x32xbf16>
    %cst_15 = arith.constant dense<0.000000e+00> : vector<16x32xf32>
    %27 = tpu.matmul %25, %26, %cst_15 {dimension_numbers = #tpu.dot_dimension_numbers<[1], [0], [0], [1], [0, 0, 1, 1], [], []>} : vector<16x64xbf16>, vector<64x32xbf16>, vector<16x32xf32> -> vector<16x32xf32>
    %c0_16 = arith.constant 0 : index
    %c0_17 = arith.constant 0 : index
    %28 = vector.load %arg3[%c0_16, %c0_17] : memref<16x32xf32, #tpu.memory_space<vmem>>, vector<16x32xf32>
    %29 = arith.addf %27, %28 : vector<16x32xf32>
    %c0_18 = arith.constant 0 : index
    %c0_19 = arith.constant 0 : index
    %30 = vector.load %arg7[%c0_18, %c0_19] : memref<1x32xf32, #tpu.memory_space<vmem>>, vector<1x32xf32>
    %31 = vector.broadcast %30 : vector<1x32xf32> to vector<16x32xf32>
    %32 = arith.addf %29, %31 : vector<16x32xf32>
    %c0_20 = arith.constant 0 : index
    %c0_21 = arith.constant 0 : index
    %33 = vector.load %arg8[%c0_20, %c0_21] : memref<16x32xf32, #tpu.memory_space<vmem>>, vector<16x32xf32>
    tpu.vector_store %arg8[%c0_20, %c0_21], %32 {strides = array<i32>} : memref<16x32xf32, #tpu.memory_space<vmem>>, vector<16x32xf32>,
    return
  }
  func.func @transform_0(%arg0: i32) -> (i32, i32) {
    %c0_i32 = arith.constant 0 : i32
    %c0_i32_0 = arith.constant 0 : i32
    return %arg0, %c0_i32 : i32, i32
  }
  func.func @transform_1(%arg0: i32) -> (i32, i32) {
    %c0_i32 = arith.constant 0 : i32
    %c0_i32_0 = arith.constant 0 : i32
    %c0_i32_1 = arith.constant 0 : i32
    return %c0_i32, %c0_i32_0 : i32, i32
  }
  func.func @transform_2(%arg0: i32) -> (i32, i32) {
    %c0_i32 = arith.constant 0 : i32
    %c0_i32_0 = arith.constant 0 : i32
    %c0_i32_1 = arith.constant 0 : i32
    return %c0_i32, %c0_i32_0 : i32, i32
  }
  func.func @transform_3(%arg0: i32) -> (i32, i32, i32) {
    %c0_i32 = arith.constant 0 : i32
    %c0_i32_0 = arith.constant 0 : i32
    %c0_i32_1 = arith.constant 0 : i32
    %c0_i32_2 = arith.constant 0 : i32
    return %c0_i32, %c0_i32_0, %c0_i32_1 : i32, i32, i32
  }
  func.func @transform_4(%arg0: i32) -> (i32, i32) {
    %c0_i32 = arith.constant 0 : i32
    %c0_i32_0 = arith.constant 0 : i32
    %c0_i32_1 = arith.constant 0 : i32
    return %c0_i32, %c0_i32_0 : i32, i32
  }
  func.func @transform_5(%arg0: i32) -> (i32, i32) {
    %c0_i32 = arith.constant 0 : i32
    %c0_i32_0 = arith.constant 0 : i32
    %c0_i32_1 = arith.constant 0 : i32
    return %c0_i32, %c0_i32_0 : i32, i32
  }
  func.func @transform_6(%arg0: i32) -> (i32, i32) {
    %c0_i32 = arith.constant 0 : i32
    %c0_i32_0 = arith.constant 0 : i32
    %c0_i32_1 = arith.constant 0 : i32
    return %c0_i32, %c0_i32_0 : i32, i32
  }
  func.func @transform_7(%arg0: i32) -> (i32, i32) {
    %c0_i32 = arith.constant 0 : i32
    %c0_i32_0 = arith.constant 0 : i32
    return %arg0, %c0_i32 : i32, i32
  }
}

</mosaic_0001>

<bundles_post_ra>
// kernel: tpu_custom_call.1
= control target key start
LH: loop header
LB: loop body
LE: loop exit
PB: predicated region body
PF: predicated region fallthrough
CT: control target
= control target key end

     0   :  { %12 = vsyncpa [#allocation3], 0  ;;  %s1106_s0 = inlined_call_operand.vmem [shape: f32[32,32], index: 0, kind: input, shape index: {}]   ;;  %s1107_s1 = inlined_call_operand.vmem [shape: f32[16,64], index: 1, kind: input, shape index: {}]   ;;  %s1108_s2 = inlined_call_operand.hbm [shape: f32[16,32], index: 2, kind: input, shape index: {}]   ;;  %s1109_s3 = inlined_call_operand.hbm [shape: bf16[1,32,64], index: 3, kind: input, shape index: {}]   ;;  %s1110_s4 = inlined_call_operand.vmem [shape: f32[1,64], index: 4, kind: input, shape index: {}]   ;;  %s1111_s5 = inlined_call_operand.vmem [shape: bf16[64,32], index: 5, kind: input, shape index: {}]   ;;  %s1112_s6 = inlined_call_operand.vmem [shape: f32[1,32], index: 6, kind: input, shape index: {}]   ;;  %s1113_s7 = inlined_call_operand.hbm [shape: f32[32,32], index: 7, kind: output, shape index: {}]  }
   0x1   :  { %13 = vsyncpa [#allocation6], 0 }
   0x2   :  { %14 = vsyncpa [#allocation4], 0 }
   0x3   :  { %16 = vsyncpa [#allocation4 + $0x1], 0  ;;  %s905_s24 = smov 0   ;;  %s907_s25 = smov 0  }
   0x4   :  { %s909_s26 = smov 0   ;;  %s911_s27 = smov 0  }
   0x5 LB: > { %s926_s28 = sadd.s32 4294967295, %s852_s27   ;;  %s593_s29 = sadd.s32 4294967294, %s852_s27   ;;  %s852_s27 = sphi %s911_s27, %s1133_s27   ;;  %s848_s26 = sphi %s909_s26, %s1132_s26   ;;  %s844_s25 = sphi %s907_s25, %s1131_s25   ;;  %s840_s24 = sphi %s905_s24, %s1130_s24  }
   0x6   : > { %s930_s30 = sadd.s32 1, %s852_s27   ;;  %s181_s8 = sadd.s32 1, %s848_s26 }
   0x7   : > { %s178_s9 = ssub.s32 %s852_s27, %s930_s30  ;;  %p191_p0 = scmp.ne.s32.totalorder %s848_s26, %s844_s25 }
   0x8   : > { %p179_p1 = scmp.eq.s32.totalorder %s178_s9, 0  ;;  %p192_p2 = scmp.eq.s32.totalorder %s926_s28, 1 }
   0x9   : > { %p197_p3 = scmp.ne.s32.totalorder %s844_s25, %s840_s24  ;;  %p198_p4 = scmp.eq.s32.totalorder %s593_s29, 1 }
   0xa   : > { %s941_s10 = scalar_select %p179_p1, %s848_s26, %s181_s8  }
   0xb   : > { %p943_p5 = por %p192_p2, %p191_p0  ;;  %p947_p6 = por %p198_p4, %p197_p3 }
   0xc   : > { %1117 = sst [smem:[#allocation11_spill]] %s941_s10  ;;  %p594_p7 = scmp.ge.s32.totalorder %s852_s27, 1 }
   0xd   : > { %s1118_s11 = scalar_select %p943_p5, 1, 0 }
   0xe   : > { %s1119_s12 = scalar_select %p947_p6, 1, 0 }
   0xf   : > { %p205_p8 = scmp.lt.s32.totalorder %s852_s27, 3  ;;  %p1114_p9 = scmp.eq.s32.totalorder %s926_s28, 0 }
  0x10   : > { %s854_s14 = smov [#allocation2]   ;;  %s855_s17 = smov [#allocation5]  }
  0x11   : > { %p954_p10 = pnand %p594_p7, %p205_p8  ;;  %s220_s15 = sshll.u32 %s854_s14, 4  ;;  %s221_s15 = int_to_ptr.vmem [resolvable:$true] %s220_s15 }
  0x12   : > { %s233_s18 = sshll.u32 %s855_s17, 4  ;;  %s726_s21 = scalar_lea.hbm %s1108_s2, 256  ;;  %s966_s18 = int_to_ptr.vmem [resolvable:$true] %s233_s18 }
  0x13   : > { %s1120_s13 = scalar_select %p954_p10, 1, 0 }
  0x14   : > { %p658_p11 = pneg %p954_p10  ;;  %p727_p13 = scmp.ne.s32.totalorder %s1108_s2, %s726_s21 }
  0x15   : > { %p733_p3 = scmp.lt.u32.totalorder %s726_s21, %s1108_s2 }
  0x16   : > { %p962_p12 = pnand %p1114_p9, %p658_p11 }
  0x18   : > { %p728_p0 = pneg %p962_p12 }
  0x1a   : > { %p729_p1 = pnand %p728_p0, %p727_p13 }
  0x1c   : > { %p730_p2 = pneg %p729_p1 }
  0x1e   : > { %p735_p4 = pnand %p733_p3, %p730_p2 }
  0x20   : > { %738 = shalt.err (!%p735_p4)
}
  0x21   : > { %s739_s9 = scalar_lea.vmem %s221_s15, 256  ;;  %p747_p9 = scmp.lt.s32.totalorder %s221_s15, %s221_s15 }
  0x22   : > { %p740_p7 = scmp.ne.s32.totalorder %s221_s15, %s739_s9  ;;  %p748_p6 = scmp.lt.s32.totalorder %s739_s9, %s739_s9 }
  0x24   : > { %p742_p8 = pnand %p740_p7, %p728_p0  ;;  %p749_p5 = por %p748_p6, %p747_p9 }
  0x26   : > { %p743_p11 = pneg %p742_p8 }
  0x28   : > { %p750_p10 = pnand %p749_p5, %p743_p11 }
  0x2a   : > { %753 = shalt.err (!%p750_p10)
}
  0x2b   : > { %s856_s14 = smov 128   ;;  %s857_s17 = smov 8  }
  0x2c   : > { %661 = dma.hbm_to_vmem [thread:$0]  (!%p962_p12), %s1108_s2, 256, %s221_s15, [#allocation3], %s856_s14, %s856_s14, %s857_s17  }
  0x2d   : > { %s754_s23 = scalar_lea.hbm %s1109_s3, 256 }
  0x2e   : > { %p755_p13 = scmp.ne.s32.totalorder %s1109_s3, %s754_s23  ;;  %p761_p9 = scmp.lt.u32.totalorder %s754_s23, %s1109_s3 }
  0x30   : > { %p757_p5 = pnand %p755_p13, %p728_p0 }
  0x32   : > { %p758_p6 = pneg %p757_p5 }
  0x34   : > { %p763_p10 = pnand %p761_p9, %p758_p6 }
  0x36   : > { %766 = shalt.err (!%p763_p10)
}
  0x37   : > { %s767_s15 = scalar_lea.vmem %s966_s18, 256  ;;  %p775_p4 = scmp.lt.s32.totalorder %s966_s18, %s966_s18 }
  0x38   : > { %p768_p1 = scmp.ne.s32.totalorder %s966_s18, %s767_s15  ;;  %p776_p7 = scmp.lt.s32.totalorder %s767_s15, %s767_s15 }
  0x3a   : > { %p770_p2 = pnand %p768_p1, %p728_p0  ;;  %p777_p8 = por %p776_p7, %p775_p4 }
  0x3c   : > { %p771_p3 = pneg %p770_p2 }
  0x3e   : > { %p778_p11 = pnand %p777_p8, %p771_p3 }
  0x40   : > { %781 = shalt.err (!%p778_p11)
}
  0x41   : > { %s858_s10 = smov 64   ;;  %s859_s14 = smov 4  }
  0x42   : > { %664 = dma.hbm_to_vmem [thread:$0]  (!%p962_p12), %s1109_s3, 256, %s966_s18, [#allocation6], %s858_s10, %s858_s10, %s859_s14  }
  0x43   : > { %p1122_p13 = scmp.ne.s32.totalorder %s1120_s13, 0 }
  0x44   : > { %p1123_p0 = scmp.eq.s32.totalorder (!%p1122_p13), %s926_s28, 0 }
  0x45   : > { %267 = sbr.rel (%p1122_p13) target bundleno = 570 (0x23a), region = 48 }
  0x4c   : > { %827 = dma.done.wait (%p1123_p0), [#allocation3], 256   ;;  %p1124_p5 = pmov %p1123_p0 }
  0x4d   : > { %p1125_p6 = pmov %p1123_p0 }
  0x4e   : > { %829 = vsyncadd (%p1124_p5), [#allocation3], 4294967040 }
  0x4f   : > { %831 = dma.done.wait (%p1125_p6), [#allocation6], 256   ;;  %p1126_p9 = pmov %p1123_p0 }
  0x50   : > { %s602_s16 = sshll.u32 %s926_s28, 1  ;;  %v860_v0 = vmov 0.0   ;;  %vm861_vm0 = vmmov 0   ;;  %v716_v1 = vld [vmem:[#allocation5] sm:$0xff]   ;;  %v717_v2 = vld [vmem:[#allocation5 + $0x8] sm:$0xff]   ;;  %vm332_vm1 = vcmask 261120  }
  0x51   : > { %833 = vsyncadd (%p1126_p9), [#allocation6], 4294967040  ;;  %628 = vmatprep.subr.bf16.mxu0 %v860_v0  ;;  %632 = vmatprep.mubr.msk.bf16.mxu0 %vm861_vm0, %v860_v0  ;;  %p304_p12 = scmp.lt.s32.totalorder %s602_s16, 3  ;;  %v718_v6 = vld [vmem:[%s1111_s5] sm:$0xff]   ;;  %v719_v7 = vld [vmem:[%s1111_s5 + $0x8] sm:$0xff]   ;;  %vm439_vm2 = vcmask 523264  }
  0x52   : > { %636 = vmatprep.subr.bf16.mxu1 %v860_v0  ;;  %644 = vmatprep.mubr.msk.bf16.mxu1 %vm861_vm0, %v860_v0  ;;  %v720_v8 = vld [vmem:[%s1111_s5 + $0x10] sm:$0xff]   ;;  %v721_v9 = vld [vmem:[%s1111_s5 + $0x18] sm:$0xff]   ;;  %v318_v10 = vld [vmem:[%s1107_s1] sm:$0xff]  ;;  %s619_s8 = sshll.u32 %s926_s28, 8  ;;  %p1127_p1 = scmp.ne.s32.totalorder %s1118_s11, 0 }
  0x53   : > { %s1135_s16 = smov (!%p304_p12, %s602_s16), 3  ;;  %629 = vmatpush3.bf16.msra.mxu0 %v716_v1  ;;  %637 = vmatpush3.bf16.msra.mxu1 %v718_v6  ;;  %v607_v12 = vld [vmem:[%s1110_s4] ss:$0 sm:$0xff]  ;;  %v319_v13 = vld [vmem:[%s1107_s1 + $0x8] sm:$0xff]  ;;  %s1059_s17 = scalar_lea.hbm %s1113_s7, %s619_s8 }
  0x54   : > { %s603_s13 = sshll.u32 %s1135_s16, 3  ;;  %630 = vmatprep.subr.bf16.mxu0 %v860_v0  ;;  %638 = vmatprep.subr.bf16.mxu1 %v860_v0  ;;  %v413_v40 = vld [vmem:[#allocation2] sm:$0xff]  ;;  %v414_v43 = vld [vmem:[#allocation2 + $0x8] sm:$0xff]  ;;  %s862_s16 = smov [#allocation7]  }
  0x55   : > { %s307_s21 = scalar_lea.vmem %s1106_s0, %s603_s13  ;;  %v613_v42 = vld [vmem:[%s1112_s6] ss:$0 sm:$0xff]  ;;  %s786_s13 = sshll.u32 %s862_s16, 4  ;;  %s787_s13 = int_to_ptr.vmem [resolvable:$false] %s786_s13 }
  0x56   : > { %v311_v3 = vld [vmem:[%s307_s21] sm:$0xff]  ;;  %v312_v4 = vld [vmem:[%s307_s21 + $0x8] sm:$0xff]  ;;  %s300_s21 = sand.u32 1, %s844_s25   ;;  %s788_s18 = scalar_lea.vmem %s787_s13, 512 }
  0x57   : > { %v313_v5 = vpack.c.bf16 %v312_v4, %v311_v3  ;;  %631 = vmatpush3.bf16.msra.mxu0 %v717_v2  ;;  %639 = vmatpush3.bf16.msra.mxu1 %v719_v7  ;;  %s601_s22 = sshll.u32 %s300_s21, 4  ;;  %s1065_s28 = scalar_lea.sflag [#allocation4], %s300_s21 }
  0x58   : > { %640 = vmatprep.subr.bf16.mxu1 %v860_v0  ;;  %s302_s9 = scalar_lea.vmem [#allocation7], %s601_s22 }
  0x59   : > { %s509_s15 = sshll.u32 %s302_s9, 4  ;;  %s1061_s15 = int_to_ptr.vmem [resolvable:$true] %s509_s15 }
  0x5a   : > { %633 = vmatmul.mubr.msk.bf16.vlgmr.msra.gmra.mrb[0].mxu0 %vm332_vm1, %v313_v5  ;;  %s782_s19 = scalar_lea.vmem %s1061_s15, 256  ;;  %p789_p4 = scmp.lt.s32.totalorder %s1061_s15, %s787_s13 }
  0x5b   : > { %641 = vmatpush3.bf16.msra.mxu1 %v720_v8  ;;  %p783_p10 = scmp.ne.s32.totalorder %s1061_s15, %s782_s19  ;;  %p790_p7 = scmp.lt.s32.totalorder %s788_s18, %s782_s19 }
  0x5c   : > { %642 = vmatprep.subr.bf16.mxu1 %v860_v0 }
  0x5d   : > { %p784_p2 = pnand %p783_p10, %p1127_p1  ;;  %p791_p8 = por %p790_p7, %p789_p4 }
  0x5f   : > { %643 = vmatpush3.bf16.msra.mxu1 %v721_v9  ;;  %p785_p3 = pneg %p784_p2 }
  0x61   : > { %p792_p11 = pnand %p791_p8, %p785_p3 }
 0x12d   : > { %v370_v11 = vpop.f32.mrb[0].mxu0 }
 0x12e   : > { %v371_v14 = vadd.f32 %v370_v11, %v318_v10  ;;  %v634_v15 = vpop.f32.mrb[1].mxu0 }
 0x12f   : > { %v373_v16 = vpop.f32.mrb[2].mxu0 }
 0x130   : > { %v384_v17 = vadd.f32 %v607_v12, %v371_v14  ;;  %v374_v18 = vadd.f32 %v373_v16, %v319_v13  ;;  %v635_v19 = vpop.f32.mrb[3].mxu0 }
 0x132   : > { %v386_v20 = vmul.f32 %v384_v17, %v384_v17  ;;  %v385_v21 = vadd.f32 %v607_v12, %v374_v18 }
 0x134   : > { %v388_v22 = vmul.f32 %v386_v20, %v384_v17  ;;  %v387_v23 = vmul.f32 %v385_v21, %v385_v21 }
 0x136   : > { %v390_v24 = vmul.f32 0.044715, %v388_v22  ;;  %v389_v25 = vmul.f32 %v387_v23, %v385_v21 }
 0x138   : > { %v392_v26 = vadd.f32 %v390_v24, %v384_v17  ;;  %v391_v27 = vmul.f32 0.044715, %v389_v25 }
 0x13a   : > { %v394_v28 = vmul.f32 0.7978846, %v392_v26  ;;  %v393_v29 = vadd.f32 %v391_v27, %v385_v21 }
 0x13c   : > { %722 = vtanh.f32 %v394_v28  ;;  %v395_v30 = vmul.f32 0.7978846, %v393_v29 }
 0x13e   : > { %724 = vtanh.f32 %v395_v30 }
 0x146   : > { %v723_v31 = vpop.eup %722 }
 0x147   : > { %v398_v32 = vadd.f32 1.0, %v723_v31 }
 0x148   : > { %v725_v33 = vpop.eup %724 }
 0x149   : > { %v399_v34 = vadd.f32 1.0, %v725_v33  ;;  %v400_v35 = vmul.f32 0.5, %v398_v32 }
 0x14b   : > { %v401_v36 = vmul.f32 0.5, %v399_v34  ;;  %v402_v37 = vmul.f32 %v400_v35, %v384_v17 }
 0x14d   : > { %v403_v38 = vmul.f32 %v401_v36, %v385_v21 }
 0x14f   : > { %v404_v39 = vpack.c.bf16 %v403_v38, %v402_v37 }
 0x151   : > { %645 = vmatmul.mubr.msk.bf16.vlgmr.msra.gmra.mrb[0].mxu1 %vm439_vm2, %v404_v39 }
 0x224   : > { %v477_v41 = vpop.f32.mrb[0].mxu1 }
 0x225   : > { %v478_v44 = vadd.f32 %v477_v41, %v413_v40  ;;  %v646_v45 = vpop.f32.mrb[1].mxu1 }
 0x226   : > { %v480_v46 = vpop.f32.mrb[2].mxu1 }
 0x227   : > { %v491_v47 = vadd.f32 %v613_v42, %v478_v44  ;;  %v481_v48 = vadd.f32 %v480_v46, %v414_v43  ;;  %v647_v49 = vpop.f32.mrb[3].mxu1 }
 0x229   : > { %493 = vst.msk [vmem:[%s302_s9] sm:$0xff] %vm332_vm1, %v491_v47  ;;  %v492_v50 = vadd.f32 %v613_v42, %v481_v48 }
 0x22b   : > { %494 = vst.msk [vmem:[%s302_s9 + $0x8] sm:$0xff] %vm332_vm1, %v492_v50 }
 0x22c   : > { %795 = shalt.err (!%p792_p11)
}
 0x22d   : > { %s796_s20 = scalar_lea.hbm %s1059_s17, 256  ;;  %s800_s23 = scalar_lea.hbm %s1113_s7, 512 }
 0x22e   : > { %p797_p13 = scmp.ne.s32.totalorder %s1059_s17, %s796_s20  ;;  %p801_p6 = scmp.lt.u32.totalorder %s1059_s17, %s1113_s7 }
 0x22f   : > { %p802_p9 = scmp.lt.u32.totalorder %s800_s23, %s796_s20  ;;  %p804_p10 = scmp.lt.u32.totalorder %s796_s20, %s1059_s17 }
 0x230   : > { %p798_p0 = pnand %p797_p13, %p1127_p1 }
 0x231   : > { %p803_p12 = por %p802_p9, %p801_p6 }
 0x232   : > { %p799_p5 = pneg %p798_p0 }
 0x233   : > { %p805_p2 = por %p804_p10, %p803_p12 }
 0x235   : > { %p806_p3 = pnand %p805_p2, %p799_p5 }
 0x237   : > { %809 = shalt.err (!%p806_p3)
}
 0x238   : > { %s863_s9 = smov 128   ;;  %s864_s10 = smov 8  }
 0x239   : > { %656 = dma.vmem_to_hbm [thread:$0]  (%p1127_p1), %s1061_s15, 256, %s1059_s17, %s1065_s28, %s863_s9, %s863_s9, %s864_s10  }
 0x23a PF: > { %p673_p4 = scmp.ge.s32.totalorder %s852_s27, 2  ;;  %s524_s14 = sand.u32 1, %s840_s24  }
 0x23b   : > { %p1128_p7 = scmp.ne.s32.totalorder %s1119_s12, 0  ;;  %s525_s19 = scalar_lea.sflag [#allocation4], %s524_s14 }
 0x23d   : > { %p666_p8 = pnand %p673_p4, %p1128_p7 }
 0x23f   : > { %835 = dma.done.wait (!%p666_p8), %s525_s19, 256  }
 0x240   : > { %837 = vsyncadd (!%p666_p8), %s525_s19, 4294967040  ;;  %s1129_s16 = sld [smem:[#allocation11_spill]]  ;;  %p19_p11 = scmp.ge.s32.totalorder %s930_s30, 4  }
 0x241   : > { %s1130_s24 = smov %s844_s25  ;;  %s1131_s25 = smov %s848_s26 }
 0x242   : > { %s1133_s27 = smov %s930_s30  ;;  %21 = sbr.rel (!%p19_p11) target bundleno = 5 (0x5), region = 92 }
 0x246   : > { %s1132_s26 = smov %s1129_s16 }
 0x249   :  { %530 = vsyncpa [#allocation3], 1 }
 0x24a   :  { %532 = vsyncpa [#allocation3 + $0x1], 1 }
 0x24b   :  { %533 = vsyncpa [#allocation6], 1 }
 0x24c   :  { %534 = vsyncpa [#allocation4], 1 }
 0x24d   :  { %536 = vsyncpa [#allocation4 + $0x1], 1 }

// kernel: tpu_custom_call.1
= control target key start
LH: loop header
LB: loop body
LE: loop exit
PB: predicated region body
PF: predicated region fallthrough
CT: control target
= control target key end

     0   :  { %12 = vsyncpa [#allocation3], 0  ;;  %s1106_s0 = inlined_call_operand.vmem [shape: f32[32,32], index: 0, kind: input, shape index: {}]   ;;  %s1107_s1 = inlined_call_operand.vmem [shape: f32[16,64], index: 1, kind: input, shape index: {}]   ;;  %s1108_s2 = inlined_call_operand.hbm [shape: f32[16,32], index: 2, kind: input, shape index: {}]   ;;  %s1109_s3 = inlined_call_operand.hbm [shape: bf16[1,32,64], index: 3, kind: input, shape index: {}]   ;;  %s1110_s4 = inlined_call_operand.vmem [shape: f32[1,64], index: 4, kind: input, shape index: {}]   ;;  %s1111_s5 = inlined_call_operand.vmem [shape: bf16[64,32], index: 5, kind: input, shape index: {}]   ;;  %s1112_s6 = inlined_call_operand.vmem [shape: f32[1,32], index: 6, kind: input, shape index: {}]   ;;  %s1113_s7 = inlined_call_operand.hbm [shape: f32[32,32], index: 7, kind: output, shape index: {}]  }
   0x1   :  { %13 = vsyncpa [#allocation6], 0 }
   0x2   :  { %14 = vsyncpa [#allocation4], 0 }
   0x3   :  { %16 = vsyncpa [#allocation4 + $0x1], 0  ;;  %s905_s24 = smov 0   ;;  %s907_s25 = smov 0  }
   0x4   :  { %s909_s26 = smov 0   ;;  %s911_s27 = smov 0  }
   0x5 LB: > { %s926_s28 = sadd.s32 4294967295, %s852_s27   ;;  %s593_s29 = sadd.s32 4294967294, %s852_s27   ;;  %s852_s27 = sphi %s911_s27, %s1133_s27   ;;  %s848_s26 = sphi %s909_s26, %s1132_s26   ;;  %s844_s25 = sphi %s907_s25, %s1131_s25   ;;  %s840_s24 = sphi %s905_s24, %s1130_s24  }
   0x6   : > { %s930_s30 = sadd.s32 1, %s852_s27   ;;  %s181_s8 = sadd.s32 1, %s848_s26 }
   0x7   : > { %s178_s9 = ssub.s32 %s852_s27, %s930_s30  ;;  %p191_p0 = scmp.ne.s32.totalorder %s848_s26, %s844_s25 }
   0x8   : > { %p179_p1 = scmp.eq.s32.totalorder %s178_s9, 0  ;;  %p192_p2 = scmp.eq.s32.totalorder %s926_s28, 1 }
   0x9   : > { %p197_p3 = scmp.ne.s32.totalorder %s844_s25, %s840_s24  ;;  %p198_p4 = scmp.eq.s32.totalorder %s593_s29, 1 }
   0xa   : > { %s941_s10 = scalar_select %p179_p1, %s848_s26, %s181_s8  }
   0xb   : > { %p943_p5 = por %p192_p2, %p191_p0  ;;  %p947_p6 = por %p198_p4, %p197_p3 }
   0xc   : > { %1117 = sst [smem:[#allocation11_spill]] %s941_s10  ;;  %p594_p7 = scmp.ge.s32.totalorder %s852_s27, 1 }
   0xd   : > { %s1118_s11 = scalar_select %p943_p5, 1, 0 }
   0xe   : > { %s1119_s12 = scalar_select %p947_p6, 1, 0 }
   0xf   : > { %p205_p8 = scmp.lt.s32.totalorder %s852_s27, 3  ;;  %p1114_p9 = scmp.eq.s32.totalorder %s926_s28, 0 }
  0x10   : > { %s854_s14 = smov [#allocation2]   ;;  %s855_s17 = smov [#allocation5]  }
  0x11   : > { %p954_p10 = pnand %p594_p7, %p205_p8  ;;  %s220_s15 = sshll.u32 %s854_s14, 4  ;;  %s221_s15 = int_to_ptr.vmem [resolvable:$true] %s220_s15 }
  0x12   : > { %s233_s18 = sshll.u32 %s855_s17, 4  ;;  %s726_s21 = scalar_lea.hbm %s1108_s2, 256  ;;  %s966_s18 = int_to_ptr.vmem [resolvable:$true] %s233_s18 }
  0x13   : > { %s1120_s13 = scalar_select %p954_p10, 1, 0 }
  0x14   : > { %p658_p11 = pneg %p954_p10  ;;  %p727_p13 = scmp.ne.s32.totalorder %s1108_s2, %s726_s21 }
  0x15   : > { %p733_p3 = scmp.lt.u32.totalorder %s726_s21, %s1108_s2 }
  0x16   : > { %p962_p12 = pnand %p1114_p9, %p658_p11 }
  0x18   : > { %p728_p0 = pneg %p962_p12 }
  0x1a   : > { %p729_p1 = pnand %p728_p0, %p727_p13 }
  0x1c   : > { %p730_p2 = pneg %p729_p1 }
  0x1e   : > { %p735_p4 = pnand %p733_p3, %p730_p2 }
  0x20   : > { %738 = shalt.err (!%p735_p4)
}
  0x21   : > { %s739_s9 = scalar_lea.vmem %s221_s15, 256  ;;  %p747_p9 = scmp.lt.s32.totalorder %s221_s15, %s221_s15 }
  0x22   : > { %p740_p7 = scmp.ne.s32.totalorder %s221_s15, %s739_s9  ;;  %p748_p6 = scmp.lt.s32.totalorder %s739_s9, %s739_s9 }
  0x24   : > { %p742_p8 = pnand %p740_p7, %p728_p0  ;;  %p749_p5 = por %p748_p6, %p747_p9 }
  0x26   : > { %p743_p11 = pneg %p742_p8 }
  0x28   : > { %p750_p10 = pnand %p749_p5, %p743_p11 }
  0x2a   : > { %753 = shalt.err (!%p750_p10)
}
  0x2b   : > { %s856_s14 = smov 128   ;;  %s857_s17 = smov 8  }
  0x2c   : > { %661 = dma.hbm_to_vmem [thread:$0]  (!%p962_p12), %s1108_s2, 256, %s221_s15, [#allocation3], %s856_s14, %s856_s14, %s857_s17  }
  0x2d   : > { %s754_s23 = scalar_lea.hbm %s1109_s3, 256 }
  0x2e   : > { %p755_p13 = scmp.ne.s32.totalorder %s1109_s3, %s754_s23  ;;  %p761_p9 = scmp.lt.u32.totalorder %s754_s23, %s1109_s3 }
  0x30   : > { %p757_p5 = pnand %p755_p13, %p728_p0 }
  0x32   : > { %p758_p6 = pneg %p757_p5 }
  0x34   : > { %p763_p10 = pnand %p761_p9, %p758_p6 }
  0x36   : > { %766 = shalt.err (!%p763_p10)
}
  0x37   : > { %s767_s15 = scalar_lea.vmem %s966_s18, 256  ;;  %p775_p4 = scmp.lt.s32.totalorder %s966_s18, %s966_s18 }
  0x38   : > { %p768_p1 = scmp.ne.s32.totalorder %s966_s18, %s767_s15  ;;  %p776_p7 = scmp.lt.s32.totalorder %s767_s15, %s767_s15 }
  0x3a   : > { %p770_p2 = pnand %p768_p1, %p728_p0  ;;  %p777_p8 = por %p776_p7, %p775_p4 }
  0x3c   : > { %p771_p3 = pneg %p770_p2 }
  0x3e   : > { %p778_p11 = pnand %p777_p8, %p771_p3 }
  0x40   : > { %781 = shalt.err (!%p778_p11)
}
  0x41   : > { %s858_s10 = smov 64   ;;  %s859_s14 = smov 4  }
  0x42   : > { %664 = dma.hbm_to_vmem [thread:$0]  (!%p962_p12), %s1109_s3, 256, %s966_s18, [#allocation6], %s858_s10, %s858_s10, %s859_s14  }
  0x43   : > { %p1122_p13 = scmp.ne.s32.totalorder %s1120_s13, 0 }
  0x44   : > { %p1123_p0 = scmp.eq.s32.totalorder (!%p1122_p13), %s926_s28, 0 }
  0x45   : > { %267 = sbr.rel (%p1122_p13) target bundleno = 570 (0x23a), region = 48 }
  0x4c   : > { %827 = dma.done.wait (%p1123_p0), [#allocation3], 256   ;;  %p1124_p5 = pmov %p1123_p0 }
  0x4d   : > { %p1125_p6 = pmov %p1123_p0 }
  0x4e   : > { %829 = vsyncadd (%p1124_p5), [#allocation3], 4294967040 }
  0x4f   : > { %831 = dma.done.wait (%p1125_p6), [#allocation6], 256   ;;  %p1126_p9 = pmov %p1123_p0 }
  0x50   : > { %s602_s16 = sshll.u32 %s926_s28, 1  ;;  %v860_v0 = vmov 0.0   ;;  %vm861_vm0 = vmmov 0   ;;  %v716_v1 = vld [vmem:[#allocation5] sm:$0xff]   ;;  %v717_v2 = vld [vmem:[#allocation5 + $0x8] sm:$0xff]   ;;  %vm332_vm1 = vcmask 261120  }
  0x51   : > { %833 = vsyncadd (%p1126_p9), [#allocation6], 4294967040  ;;  %628 = vmatprep.subr.bf16.mxu0 %v860_v0  ;;  %632 = vmatprep.mubr.msk.bf16.mxu0 %vm861_vm0, %v860_v0  ;;  %p304_p12 = scmp.lt.s32.totalorder %s602_s16, 3  ;;  %v718_v6 = vld [vmem:[%s1111_s5] sm:$0xff]   ;;  %v719_v7 = vld [vmem:[%s1111_s5 + $0x8] sm:$0xff]   ;;  %vm439_vm2 = vcmask 523264  }
  0x52   : > { %636 = vmatprep.subr.bf16.mxu1 %v860_v0  ;;  %644 = vmatprep.mubr.msk.bf16.mxu1 %vm861_vm0, %v860_v0  ;;  %v720_v8 = vld [vmem:[%s1111_s5 + $0x10] sm:$0xff]   ;;  %v721_v9 = vld [vmem:[%s1111_s5 + $0x18] sm:$0xff]   ;;  %v318_v10 = vld [vmem:[%s1107_s1] sm:$0xff]  ;;  %s619_s8 = sshll.u32 %s926_s28, 8  ;;  %p1127_p1 = scmp.ne.s32.totalorder %s1118_s11, 0 }
  0x53   : > { %s1135_s16 = smov (!%p304_p12, %s602_s16), 3  ;;  %629 = vmatpush3.bf16.msra.mxu0 %v716_v1  ;;  %637 = vmatpush3.bf16.msra.mxu1 %v718_v6  ;;  %v607_v12 = vld [vmem:[%s1110_s4] ss:$0 sm:$0xff]  ;;  %v319_v13 = vld [vmem:[%s1107_s1 + $0x8] sm:$0xff]  ;;  %s1059_s17 = scalar_lea.hbm %s1113_s7, %s619_s8 }
  0x54   : > { %s603_s13 = sshll.u32 %s1135_s16, 3  ;;  %630 = vmatprep.subr.bf16.mxu0 %v860_v0  ;;  %638 = vmatprep.subr.bf16.mxu1 %v860_v0  ;;  %v413_v40 = vld [vmem:[#allocation2] sm:$0xff]  ;;  %v414_v43 = vld [vmem:[#allocation2 + $0x8] sm:$0xff]  ;;  %s862_s16 = smov [#allocation7]  }
  0x55   : > { %s307_s21 = scalar_lea.vmem %s1106_s0, %s603_s13  ;;  %v613_v42 = vld [vmem:[%s1112_s6] ss:$0 sm:$0xff]  ;;  %s786_s13 = sshll.u32 %s862_s16, 4  ;;  %s787_s13 = int_to_ptr.vmem [resolvable:$false] %s786_s13 }
  0x56   : > { %v311_v3 = vld [vmem:[%s307_s21] sm:$0xff]  ;;  %v312_v4 = vld [vmem:[%s307_s21 + $0x8] sm:$0xff]  ;;  %s300_s21 = sand.u32 1, %s844_s25   ;;  %s788_s18 = scalar_lea.vmem %s787_s13, 512 }
  0x57   : > { %v313_v5 = vpack.c.bf16 %v312_v4, %v311_v3  ;;  %631 = vmatpush3.bf16.msra.mxu0 %v717_v2  ;;  %639 = vmatpush3.bf16.msra.mxu1 %v719_v7  ;;  %s601_s22 = sshll.u32 %s300_s21, 4  ;;  %s1065_s28 = scalar_lea.sflag [#allocation4], %s300_s21 }
  0x58   : > { %640 = vmatprep.subr.bf16.mxu1 %v860_v0  ;;  %s302_s9 = scalar_lea.vmem [#allocation7], %s601_s22 }
  0x59   : > { %s509_s15 = sshll.u32 %s302_s9, 4  ;;  %s1061_s15 = int_to_ptr.vmem [resolvable:$true] %s509_s15 }
  0x5a   : > { %633 = vmatmul.mubr.msk.bf16.vlgmr.msra.gmra.mrb[0].mxu0 %vm332_vm1, %v313_v5  ;;  %s782_s19 = scalar_lea.vmem %s1061_s15, 256  ;;  %p789_p4 = scmp.lt.s32.totalorder %s1061_s15, %s787_s13 }
  0x5b   : > { %641 = vmatpush3.bf16.msra.mxu1 %v720_v8  ;;  %p783_p10 = scmp.ne.s32.totalorder %s1061_s15, %s782_s19  ;;  %p790_p7 = scmp.lt.s32.totalorder %s788_s18, %s782_s19 }
  0x5c   : > { %642 = vmatprep.subr.bf16.mxu1 %v860_v0 }
  0x5d   : > { %p784_p2 = pnand %p783_p10, %p1127_p1  ;;  %p791_p8 = por %p790_p7, %p789_p4 }
  0x5f   : > { %643 = vmatpush3.bf16.msra.mxu1 %v721_v9  ;;  %p785_p3 = pneg %p784_p2 }
  0x61   : > { %p792_p11 = pnand %p791_p8, %p785_p3 }
 0x12d   : > { %v370_v11 = vpop.f32.mrb[0].mxu0 }
 0x12e   : > { %v371_v14 = vadd.f32 %v370_v11, %v318_v10  ;;  %v634_v15 = vpop.f32.mrb[1].mxu0 }
 0x12f   : > { %v373_v16 = vpop.f32.mrb[2].mxu0 }
 0x130   : > { %v384_v17 = vadd.f32 %v607_v12, %v371_v14  ;;  %v374_v18 = vadd.f32 %v373_v16, %v319_v13  ;;  %v635_v19 = vpop.f32.mrb[3].mxu0 }
 0x132   : > { %v386_v20 = vmul.f32 %v384_v17, %v384_v17  ;;  %v385_v21 = vadd.f32 %v607_v12, %v374_v18 }
 0x134   : > { %v388_v22 = vmul.f32 %v386_v20, %v384_v17  ;;  %v387_v23 = vmul.f32 %v385_v21, %v385_v21 }
 0x136   : > { %v390_v24 = vmul.f32 0.044715, %v388_v22  ;;  %v389_v25 = vmul.f32 %v387_v23, %v385_v21 }
 0x138   : > { %v392_v26 = vadd.f32 %v390_v24, %v384_v17  ;;  %v391_v27 = vmul.f32 0.044715, %v389_v25 }
 0x13a   : > { %v394_v28 = vmul.f32 0.7978846, %v392_v26  ;;  %v393_v29 = vadd.f32 %v391_v27, %v385_v21 }
 0x13c   : > { %722 = vtanh.f32 %v394_v28  ;;  %v395_v30 = vmul.f32 0.7978846, %v393_v29 }
 0x13e   : > { %724 = vtanh.f32 %v395_v30 }
 0x146   : > { %v723_v31 = vpop.eup %722 }
 0x147   : > { %v398_v32 = vadd.f32 1.0, %v723_v31 }
 0x148   : > { %v725_v33 = vpop.eup %724 }
 0x149   : > { %v399_v34 = vadd.f32 1.0, %v725_v33  ;;  %v400_v35 = vmul.f32 0.5, %v398_v32 }
 0x14b   : > { %v401_v36 = vmul.f32 0.5, %v399_v34  ;;  %v402_v37 = vmul.f32 %v400_v35, %v384_v17 }
 0x14d   : > { %v403_v38 = vmul.f32 %v401_v36, %v385_v21 }
 0x14f   : > { %v404_v39 = vpack.c.bf16 %v403_v38, %v402_v37 }
 0x151   : > { %645 = vmatmul.mubr.msk.bf16.vlgmr.msra.gmra.mrb[0].mxu1 %vm439_vm2, %v404_v39 }
 0x224   : > { %v477_v41 = vpop.f32.mrb[0].mxu1 }
 0x225   : > { %v478_v44 = vadd.f32 %v477_v41, %v413_v40  ;;  %v646_v45 = vpop.f32.mrb[1].mxu1 }
 0x226   : > { %v480_v46 = vpop.f32.mrb[2].mxu1 }
 0x227   : > { %v491_v47 = vadd.f32 %v613_v42, %v478_v44  ;;  %v481_v48 = vadd.f32 %v480_v46, %v414_v43  ;;  %v647_v49 = vpop.f32.mrb[3].mxu1 }
 0x229   : > { %493 = vst.msk [vmem:[%s302_s9] sm:$0xff] %vm332_vm1, %v491_v47  ;;  %v492_v50 = vadd.f32 %v613_v42, %v481_v48 }
 0x22b   : > { %494 = vst.msk [vmem:[%s302_s9 + $0x8] sm:$0xff] %vm332_vm1, %v492_v50 }
 0x22c   : > { %795 = shalt.err (!%p792_p11)
}
 0x22d   : > { %s796_s20 = scalar_lea.hbm %s1059_s17, 256  ;;  %s800_s23 = scalar_lea.hbm %s1113_s7, 512 }
 0x22e   : > { %p797_p13 = scmp.ne.s32.totalorder %s1059_s17, %s796_s20  ;;  %p801_p6 = scmp.lt.u32.totalorder %s1059_s17, %s1113_s7 }
 0x22f   : > { %p802_p9 = scmp.lt.u32.totalorder %s800_s23, %s796_s20  ;;  %p804_p10 = scmp.lt.u32.totalorder %s796_s20, %s1059_s17 }
 0x230   : > { %p798_p0 = pnand %p797_p13, %p1127_p1 }
 0x231   : > { %p803_p12 = por %p802_p9, %p801_p6 }
 0x232   : > { %p799_p5 = pneg %p798_p0 }
 0x233   : > { %p805_p2 = por %p804_p10, %p803_p12 }
 0x235   : > { %p806_p3 = pnand %p805_p2, %p799_p5 }
 0x237   : > { %809 = shalt.err (!%p806_p3)
}
 0x238   : > { %s863_s9 = smov 128   ;;  %s864_s10 = smov 8  }
 0x239   : > { %656 = dma.vmem_to_hbm [thread:$0]  (%p1127_p1), %s1061_s15, 256, %s1059_s17, %s1065_s28, %s863_s9, %s863_s9, %s864_s10  }
 0x23a PF: > { %p673_p4 = scmp.ge.s32.totalorder %s852_s27, 2  ;;  %s524_s14 = sand.u32 1, %s840_s24  }
 0x23b   : > { %p1128_p7 = scmp.ne.s32.totalorder %s1119_s12, 0  ;;  %s525_s19 = scalar_lea.sflag [#allocation4], %s524_s14 }
 0x23d   : > { %p666_p8 = pnand %p673_p4, %p1128_p7 }
 0x23f   : > { %835 = dma.done.wait (!%p666_p8), %s525_s19, 256  }
 0x240   : > { %837 = vsyncadd (!%p666_p8), %s525_s19, 4294967040  ;;  %s1129_s16 = sld [smem:[#allocation11_spill]]  ;;  %p19_p11 = scmp.ge.s32.totalorder %s930_s30, 4  }
 0x241   : > { %s1130_s24 = smov %s844_s25  ;;  %s1131_s25 = smov %s848_s26 }
 0x242   : > { %s1133_s27 = smov %s930_s30  ;;  %21 = sbr.rel (!%p19_p11) target bundleno = 5 (0x5), region = 92 }
 0x246   : > { %s1132_s26 = smov %s1129_s16 }
 0x249   :  { %530 = vsyncpa [#allocation3], 1 }
 0x24a   :  { %532 = vsyncpa [#allocation3 + $0x1], 1 }
 0x24b   :  { %533 = vsyncpa [#allocation6], 1 }
 0x24c   :  { %534 = vsyncpa [#allocation4], 1 }
 0x24d   :  { %536 = vsyncpa [#allocation4 + $0x1], 1 }

</bundles_post_ra>
